<compile_context>
chip_gen: v7x
topology: tpu7x:2x2x1
jax: 0.10.0
libtpu: 0.0.40
codegen_flags: <defaults>
</compile_context>

<pallas_src>
import functools

import jax
import jax.numpy as jnp
from jax.experimental import pallas as pl
from jax.experimental.pallas import tpu as pltpu

_LANE = 128
_SUBLANE = 8
_VPAD = 512  # pad V to a multiple of 512 so lane-dense tk=tn=512 tiles always apply


def _round_up(n, m):
    return ((n + m - 1) // m) * m


# ----------------------------- kernels -----------------------------


def _layer1_kernel(x_ref, w1_ref, b1_ref, h_ref, acc_ref):
    """h = relu(x @ w1 + b1); k (vocab) is the streamed reduction axis."""
    k = pl.program_id(1)

    @pl.when(k == 0)
    def _():
        acc_ref[...] = jnp.zeros_like(acc_ref)

    acc_ref[...] += jnp.dot(x_ref[...], w1_ref[...], preferred_element_type=jnp.float32)

    @pl.when(k == pl.num_programs(1) - 1)
    def _():
        h_ref[...] = jnp.maximum(acc_ref[...] + b1_ref[...], 0.0).astype(h_ref.dtype)


def _layer2_kernel(h_ref, w2_ref, b2_ref, o_ref):
    """o = h @ w2 + b2, streamed over lane-dense output-vocab (j) tiles."""
    y = jnp.dot(h_ref[...], w2_ref[...], preferred_element_type=jnp.float32)
    o_ref[...] = (y + b2_ref[...]).astype(o_ref.dtype)


# --------------------------- pallas calls ---------------------------


def _vmem_limit(block_bytes):
    """Declared VMEM limit: >= estimated footprint, capped at ~75% of physical VMEM."""
    try:
        cap = int(pltpu.get_tpu_info().vmem_capacity_bytes)
    except Exception:
        cap = 128 * 1024 * 1024
    budget = (cap * 3) // 4
    want = max(block_bytes + (2 << 20), 16 << 20)
    # never declare less than the actual footprint (+1 MiB slack)
    return int(max(min(want, budget), block_bytes + (1 << 20)))


@functools.partial(jax.jit, static_argnames=("tb", "tk", "tn", "out_dtype"))
def _forward_padded(xp, w1p, b1p, w2p, b2p, *, tb, tk, tn, out_dtype):
    Bp, Vp = xp.shape
    Ep = w1p.shape[1]
    out_bytes = jnp.dtype(out_dtype).itemsize

    # ---- Layer 1: h = relu(x @ w1 + b1); grid (i, k), k = reduction ----
    l1_block_bytes = (
        2 * (tb * tk * 2 + tk * Ep * 2 + Ep * 4 + tb * Ep * 2)  # double-buffered tiles
        + tb * Ep * 4                                           # f32 accumulator scratch
    )
    h = pl.pallas_call(
        _layer1_kernel,
        out_shape=jax.ShapeDtypeStruct((Bp, Ep), jnp.bfloat16),
        grid_spec=pltpu.PrefetchScalarGridSpec(
            num_scalar_prefetch=0,
            grid=(Bp // tb, Vp // tk),
            in_specs=[
                pl.BlockSpec((tb, tk), lambda i, k: (i, k)),   # x tile (bf16)
                pl.BlockSpec((tk, Ep), lambda i, k: (k, 0)),   # w1 tile (bf16), streamed over k
                pl.BlockSpec((1, Ep), lambda i, k: (0, 0)),    # b1 (f32, tiny, k-invariant)
            ],
            out_specs=pl.BlockSpec((tb, Ep), lambda i, k: (i, 0)),
            scratch_shapes=[pltpu.VMEM((tb, Ep), jnp.float32)],
        ),
        compiler_params=pltpu.CompilerParams(
            dimension_semantics=("parallel", "arbitrary"),
            vmem_limit_bytes=_vmem_limit(l1_block_bytes),
        ),
        cost_estimate=pl.CostEstimate(
            flops=2 * Bp * Vp * Ep,
            transcendentals=0,
            bytes_accessed=Bp * Vp * 2 + Vp * Ep * 2 + Ep * 4 + Bp * Ep * 2,
        ),
    )(xp, w1p, b1p)

    # ---- Layer 2: o = h @ w2 + b2; grid (i, j), both axes independent ----
    # NOTE: h/b2 blocks are small; default double-buffering costs little VMEM here.
    # pipeline_mode=pl.Buffered(1) on the j-invariant h spec could shave a few hundred KiB more.
    l2_block_bytes = 2 * (tb * Ep * 2 + Ep * tn * 2 + tn * 4 + tb * tn * out_bytes)
    out = pl.pallas_call(
        _layer2_kernel,
        out_shape=jax.ShapeDtypeStruct((Bp, Vp), out_dtype),
        grid_spec=pltpu.PrefetchScalarGridSpec(
            num_scalar_prefetch=0,
            grid=(Bp // tb, Vp // tn),
            in_specs=[
                pl.BlockSpec((tb, Ep), lambda i, j: (i, 0)),   # h tile (bf16, j-invariant)
                pl.BlockSpec((Ep, tn), lambda i, j: (0, j)),   # w2 tile (bf16), streamed over j
                pl.BlockSpec((1, tn), lambda i, j: (0, j)),    # b2 tile (f32)
            ],
            out_specs=pl.BlockSpec((tb, tn), lambda i, j: (i, j)),
        ),
        compiler_params=pltpu.CompilerParams(
            dimension_semantics=("parallel", "parallel"),
            vmem_limit_bytes=_vmem_limit(l2_block_bytes),
        ),
        cost_estimate=pl.CostEstimate(
            flops=2 * Bp * Ep * Vp,
            transcendentals=0,
            bytes_accessed=Bp * Ep * 2 + Ep * Vp * 2 + Vp * 4 + Bp * Vp * out_bytes,
        ),
    )(h, w2p, b2p)
    return out


# ----------------------------- wrappers -----------------------------


def prepare_params(w1, b1, w2, b2):
    """Pad + bf16-cast the weights ONCE (hoisted out of the per-call forward path).

    w1 : (V, E), b1 : (E,) or (1, E), w2 : (E, V), b2 : (V,) or (1, V) — float32,
    i.e. the transposed PyTorch nn.Linear weights.
    """
    V, E = w1.shape
    Vp = _round_up(V, _VPAD)
    Ep = _round_up(E, _LANE)
    b1 = jnp.asarray(b1, jnp.float32).reshape(1, -1)
    b2 = jnp.asarray(b2, jnp.float32).reshape(1, -1)
    # Zero padding is exact: padded x cols hit zero w1 rows; padded hidden cols have zero bias
    # and hit zero w2 rows; padded output cols are sliced off in the forward.
    w1p = jnp.zeros((Vp, Ep), jnp.bfloat16).at[:V, :E].set(w1.astype(jnp.bfloat16))
    b1p = jnp.zeros((1, Ep), jnp.float32).at[:, :E].set(b1)
    w2p = jnp.zeros((Ep, Vp), jnp.bfloat16).at[:E, :V].set(w2.astype(jnp.bfloat16))
    b2p = jnp.zeros((1, Vp), jnp.float32).at[:, :V].set(b2)
    return dict(w1p=w1p, b1p=b1p, w2p=w2p, b2p=b2p, V=V, E=E, Vp=Vp, Ep=Ep)


def myword2vec_forward(x, params, *, tb=None, tk=None, tn=None, out_dtype=jnp.float32):
    """Forward of MyWord2VecNet: relu(x @ w1 + b1) @ w2 + b2.

    x      : (B, V) float32
    params : output of prepare_params (padded bf16 weights, cached across calls)
    returns (B, V) in out_dtype (default float32, matching the PyTorch module)
    """
    B, V = x.shape
    assert V == params["V"], "x feature dim must match the prepared vocabulary size"
    Vp, Ep = params["Vp"], params["Ep"]

    if tb is None:
        if B <= 256:
            tb = _round_up(B, _SUBLANE)
        elif B <= 1024:
            tb = _round_up((B + 1) // 2, _LANE)   # keep >=2 "parallel" i tiles (dual-TC v7x)
        else:
            tb = 512
    Bp = _round_up(B, tb)
    if tk is None:
        tk = min(Vp, 512)                          # Vp is a multiple of 512, so tk | Vp
    if tn is None:
        tn = min(Vp, 512)

    # Only the activations are padded per call (weights were padded once in prepare_params).
    xp = jnp.zeros((Bp, Vp), jnp.bfloat16).at[:B, :V].set(x.astype(jnp.bfloat16))
    out = _forward_padded(xp, params["w1p"], params["b1p"], params["w2p"], params["b2p"],
                          tb=tb, tk=tk, tn=tn, out_dtype=out_dtype)
    return out[:B, :V]


def init_params(key, vocabulary_size=5, embedding_size=3):
    """Deterministic init matching PyTorch nn.Linear (U(-1/sqrt(in), 1/sqrt(in)))."""
    k1, k2, k3, k4 = jax.random.split(key, 4)
    lim1 = 1.0 / jnp.sqrt(jnp.float32(vocabulary_size))
    lim2 = 1.0 / jnp.sqrt(jnp.float32(embedding_size))
    # PyTorch stores (out, in); we keep the transposed (in, out) layout for the kernel.
    w1 = jax.random.uniform(k1, (vocabulary_size, embedding_size), jnp.float32, -lim1, lim1)
    b1 = jax.random.uniform(k2, (1, embedding_size), jnp.float32, -lim1, lim1)
    w2 = jax.random.uniform(k3, (embedding_size, vocabulary_size), jnp.float32, -lim2, lim2)
    b2 = jax.random.uniform(k4, (1, vocabulary_size), jnp.float32, -lim2, lim2)
    return w1, b1, w2, b2


if __name__ == "__main__":
    vocabulary_size = 5
    embedding_size = 3
    batch = 8

    key = jax.random.PRNGKey(0)
    kx, kp = jax.random.split(key)

    # Word vectors, float32, shape (batch, vocabulary_size) — same as the PyTorch module input.
    x = jax.random.uniform(kx, (batch, vocabulary_size), jnp.float32)
    w1, b1, w2, b2 = init_params(kp, vocabulary_size, embedding_size)

    # Weight padding / bf16 cast hoisted out of the forward path (done once).
    params = prepare_params(w1, b1, w2, b2)

    out = myword2vec_forward(x, params)
    out = jax.block_until_ready(out)
    assert out.shape == (batch, vocabulary_size)
    assert out.dtype == jnp.float32

    # Reference with matching bf16 operand rounding / f32 accumulation.
    xb = x.astype(jnp.bfloat16).astype(jnp.float32)
    w1b = w1.astype(jnp.bfloat16).astype(jnp.float32)
    w2b = w2.astype(jnp.bfloat16).astype(jnp.float32)
    h = jnp.maximum(xb @ w1b + b1, 0.0)
    ref_bf16 = h.astype(jnp.bfloat16).astype(jnp.float32) @ w2b + b2
    assert jnp.allclose(out, ref_bf16, atol=1e-3, rtol=1e-3)

    # Loose check against the pure f32 math of the original module.
    ref_f32 = jnp.maximum(x @ w1 + b1, 0.0) @ w2 + b2
    assert jnp.allclose(out, ref_f32, atol=2e-2, rtol=2e-2)

    print("KERNEL_OK")
</pallas_src>

<mosaic_0001>
module attributes {stable_mosaic.version = 11 : i64} {
  func.func @_layer2_kernel(%arg0: i32, %arg1: i32, %arg2: memref<8x128xbf16, #tpu.memory_space<vmem>>, %arg3: memref<128x512xbf16, #tpu.memory_space<vmem>>, %arg4: memref<1x512xf32, #tpu.memory_space<vmem>>, %arg5: memref<8x512xf32, #tpu.memory_space<vmem>>) attributes {dimension_semantics = [#tpu.dimension_semantics<parallel>, #tpu.dimension_semantics<parallel>], iteration_bounds = array<i64: 1, 1>, scalar_prefetch = 0 : i64, scratch_operands = 0 : i64, tpu.core_type = #tpu.core_type<tc>, window_params = [{transform_indices = @transform_0, window_bounds = array<i64: 8, 128>}, {transform_indices = @transform_1, window_bounds = array<i64: 128, 512>}, {transform_indices = @transform_2, window_bounds = array<i64: 1, 512>}, {transform_indices = @transform_3, window_bounds = array<i64: 8, 512>}]} {
    %c0 = arith.constant 0 : index
    %c0_0 = arith.constant 0 : index
    %0 = vector.load %arg2[%c0, %c0_0] : memref<8x128xbf16, #tpu.memory_space<vmem>>, vector<8x128xbf16>
    %c0_1 = arith.constant 0 : index
    %c0_2 = arith.constant 0 : index
    %1 = vector.load %arg3[%c0_1, %c0_2] : memref<128x512xbf16, #tpu.memory_space<vmem>>, vector<128x512xbf16>
    %cst = arith.constant dense<0.000000e+00> : vector<8x512xf32>
    %2 = tpu.matmul %0, %1, %cst {dimension_numbers = #tpu.dot_dimension_numbers<[1], [0], [0], [1], [0, 0, 1, 1], [], []>} : vector<8x128xbf16>, vector<128x512xbf16>, vector<8x512xf32> -> vector<8x512xf32>
    %c0_3 = arith.constant 0 : index
    %c0_4 = arith.constant 0 : index
    %3 = vector.load %arg4[%c0_3, %c0_4] : memref<1x512xf32, #tpu.memory_space<vmem>>, vector<1x512xf32>
    %4 = vector.broadcast %3 : vector<1x512xf32> to vector<8x512xf32>
    %5 = arith.addf %2, %4 : vector<8x512xf32>
    %c0_5 = arith.constant 0 : index
    %c0_6 = arith.constant 0 : index
    %6 = vector.load %arg5[%c0_5, %c0_6] : memref<8x512xf32, #tpu.memory_space<vmem>>, vector<8x512xf32>
    tpu.vector_store %arg5[%c0_5, %c0_6], %5 {strides = array<i32>} : memref<8x512xf32, #tpu.memory_space<vmem>>, vector<8x512xf32>,
    return
  }
  func.func @transform_0(%arg0: i32, %arg1: i32) -> (i32, i32) {
    %c0_i32 = arith.constant 0 : i32
    %c0_i32_0 = arith.constant 0 : i32
    return %arg0, %c0_i32 : i32, i32
  }
  func.func @transform_1(%arg0: i32, %arg1: i32) -> (i32, i32) {
    %c0_i32 = arith.constant 0 : i32
    %c0_i32_0 = arith.constant 0 : i32
    return %c0_i32, %arg1 : i32, i32
  }
  func.func @transform_2(%arg0: i32, %arg1: i32) -> (i32, i32) {
    %c0_i32 = arith.constant 0 : i32
    %c0_i32_0 = arith.constant 0 : i32
    return %c0_i32, %arg1 : i32, i32
  }
  func.func @transform_3(%arg0: i32, %arg1: i32) -> (i32, i32) {
    %c0_i32 = arith.constant 0 : i32
    return %arg0, %arg1 : i32, i32
  }
}

module attributes {stable_mosaic.version = 11 : i64} {
  func.func @_layer1_kernel(%arg0: i32, %arg1: i32, %arg2: memref<8x512xbf16, #tpu.memory_space<vmem>>, %arg3: memref<512x128xbf16, #tpu.memory_space<vmem>>, %arg4: memref<1x128xf32, #tpu.memory_space<vmem>>, %arg5: memref<8x128xbf16, #tpu.memory_space<vmem>>, %arg6: memref<8x128xf32, #tpu.memory_space<vmem>>) attributes {dimension_semantics = [#tpu.dimension_semantics<parallel>, #tpu.dimension_semantics<arbitrary>], iteration_bounds = array<i64: 1, 1>, scalar_prefetch = 0 : i64, scratch_operands = 1 : i64, tpu.core_type = #tpu.core_type<tc>, window_params = [{transform_indices = @transform_0, window_bounds = array<i64: 8, 512>}, {transform_indices = @transform_1, window_bounds = array<i64: 512, 128>}, {pipeline_mode = #tpu.pipeline_mode<synchronous>, transform_indices = @transform_2, window_bounds = array<i64: 1, 128>}, {transform_indices = @transform_3, window_bounds = array<i64: 8, 128>}]} {
    %c0_i32 = arith.constant 0 : i32
    %0 = arith.cmpi eq, %arg1, %c0_i32 : i32
    %1 = arith.extui %0 : i1 to i32
    %c0_i32_0 = arith.constant 0 : i32
    %2 = arith.cmpi ne, %1, %c0_i32_0 : i32
    scf.if %2 {
      %cst_10 = arith.constant 0.000000e+00 : f32
      %12 = vector.broadcast %cst_10 : f32 to vector<8x128xf32>
      %c0_11 = arith.constant 0 : index
      %c0_12 = arith.constant 0 : index
      %13 = vector.load %arg6[%c0_11, %c0_12] : memref<8x128xf32, #tpu.memory_space<vmem>>, vector<8x128xf32>
      tpu.vector_store %arg6[%c0_11, %c0_12], %12 {strides = array<i32>} : memref<8x128xf32, #tpu.memory_space<vmem>>, vector<8x128xf32>,
    } else {
    }
    %c0 = arith.constant 0 : index
    %c0_1 = arith.constant 0 : index
    %3 = vector.load %arg6[%c0, %c0_1] : memref<8x128xf32, #tpu.memory_space<vmem>>, vector<8x128xf32>
    %c0_2 = arith.constant 0 : index
    %c0_3 = arith.constant 0 : index
    %4 = vector.load %arg2[%c0_2, %c0_3] : memref<8x512xbf16, #tpu.memory_space<vmem>>, vector<8x512xbf16>
    %c0_4 = arith.constant 0 : index
    %c0_5 = arith.constant 0 : index
    %5 = vector.load %arg3[%c0_4, %c0_5] : memref<512x128xbf16, #tpu.memory_space<vmem>>, vector<512x128xbf16>
    %cst = arith.constant dense<0.000000e+00> : vector<8x128xf32>
    %6 = tpu.matmul %4, %5, %cst {dimension_numbers = #tpu.dot_dimension_numbers<[1], [0], [0], [1], [0, 0, 1, 1], [], []>} : vector<8x512xbf16>, vector<512x128xbf16>, vector<8x128xf32> -> vector<8x128xf32>
    %7 = arith.addf %3, %6 : vector<8x128xf32>
    %c0_6 = arith.constant 0 : index
    %c0_7 = arith.constant 0 : index
    %8 = vector.load %arg6[%c0_6, %c0_7] : memref<8x128xf32, #tpu.memory_space<vmem>>, vector<8x128xf32>
    tpu.vector_store %arg6[%c0_6, %c0_7], %7 {strides = array<i32>} : memref<8x128xf32, #tpu.memory_space<vmem>>, vector<8x128xf32>,
    %c0_i32_8 = arith.constant 0 : i32
    %9 = arith.cmpi eq, %arg1, %c0_i32_8 : i32
    %10 = arith.extui %9 : i1 to i32
    %c0_i32_9 = arith.constant 0 : i32
    %11 = arith.cmpi ne, %10, %c0_i32_9 : i32
    scf.if %11 {
      %c0_10 = arith.constant 0 : index
      %c0_11 = arith.constant 0 : index
      %12 = vector.load %arg6[%c0_10, %c0_11] : memref<8x128xf32, #tpu.memory_space<vmem>>, vector<8x128xf32>
      %c0_12 = arith.constant 0 : index
      %c0_13 = arith.constant 0 : index
      %13 = vector.load %arg4[%c0_12, %c0_13] : memref<1x128xf32, #tpu.memory_space<vmem>>, vector<1x128xf32>
      %14 = vector.broadcast %13 : vector<1x128xf32> to vector<8x128xf32>
      %15 = arith.addf %12, %14 : vector<8x128xf32>
      %cst_14 = arith.constant 0.000000e+00 : f32
      %16 = vector.broadcast %cst_14 : f32 to vector<8x128xf32>
      %17 = arith.maximumf %15, %16 : vector<8x128xf32>
      %18 = arith.truncf %17 : vector<8x128xf32> to vector<8x128xbf16>
      %c0_15 = arith.constant 0 : index
      %c0_16 = arith.constant 0 : index
      %19 = vector.load %arg5[%c0_15, %c0_16] : memref<8x128xbf16, #tpu.memory_space<vmem>>, vector<8x128xbf16>
      tpu.vector_store %arg5[%c0_15, %c0_16], %18 {strides = array<i32>} : memref<8x128xbf16, #tpu.memory_space<vmem>>, vector<8x128xbf16>,
    } else {
    }
    return
  }
  func.func @transform_0(%arg0: i32, %arg1: i32) -> (i32, i32) {
    %c0_i32 = arith.constant 0 : i32
    return %arg0, %arg1 : i32, i32
  }
  func.func @transform_1(%arg0: i32, %arg1: i32) -> (i32, i32) {
    %c0_i32 = arith.constant 0 : i32
    %c0_i32_0 = arith.constant 0 : i32
    return %arg1, %c0_i32 : i32, i32
  }
  func.func @transform_2(%arg0: i32, %arg1: i32) -> (i32, i32) {
    %c0_i32 = arith.constant 0 : i32
    %c0_i32_0 = arith.constant 0 : i32
    %c0_i32_1 = arith.constant 0 : i32
    return %c0_i32, %c0_i32_0 : i32, i32
  }
  func.func @transform_3(%arg0: i32, %arg1: i32) -> (i32, i32) {
    %c0_i32 = arith.constant 0 : i32
    %c0_i32_0 = arith.constant 0 : i32
    return %arg0, %c0_i32 : i32, i32
  }
}

</mosaic_0001>

<bundles_post_ra>
// kernel: _forward_padded.3
= control target key start
LH: loop header
LB: loop body
LE: loop exit
PB: predicated region body
PF: predicated region fallthrough
CT: control target
= control target key end

     0   :  { %v437_v2 = vmov 0   ;;  %s573_s0 = inlined_call_operand.vmem [shape: bf16[8,128], index: 0, kind: input, shape index: {}]   ;;  %s574_s1 = inlined_call_operand.vmem [shape: bf16[128,512], index: 1, kind: input, shape index: {}]   ;;  %s575_s2 = inlined_call_operand.vmem [shape: f32[1,512], index: 2, kind: input, shape index: {}]   ;;  %s576_s3 = inlined_call_operand.hbm [shape: f32[8,512], index: 3, kind: output, shape index: {}]  }
   0x1   :  { %v365_v0 = vld [vmem:[%s574_s1 + $0x4] ss:$16 sps:$4 sm:$0xff]   ;;  %v367_v1 = vld [vmem:[%s574_s1 + $0xc] ss:$16 sps:$4 sm:$0xff]   ;;  %263 = vmatprep.mubr.bf16.mxu0 %v437_v2  ;;  %304 = vmatprep.mubr.bf16.mxu1 %v437_v2  ;;  %v369_v3 = vld [vmem:[%s574_s1] ss:$16 sps:$4 sm:$0xff]  }
   0x2   :  { %231 = vmatprep.subr.bf16.mxu0 %v365_v0  ;;  %v370_v4 = vld [vmem:[%s574_s1 + $0x8] ss:$16 sps:$4 sm:$0xff]   ;;  %272 = vmatprep.subr.bf16.mxu1 %v367_v1  ;;  %v371_v5 = vld [vmem:[%s574_s1 + $0x24] ss:$16 sps:$4 sm:$0xff]   ;;  %v373_v6 = vld [vmem:[%s574_s1 + $0x2c] ss:$16 sps:$4 sm:$0xff]  }
   0x3   :  { %232 = vmatpush1.bf16.msra.mxu0 %v369_v3  ;;  %273 = vmatpush1.bf16.msra.mxu1 %v370_v4  ;;  %v375_v7 = vld [vmem:[%s574_s1 + $0x20] ss:$16 sps:$4 sm:$0xff]   ;;  %v376_v8 = vld [vmem:[%s574_s1 + $0x28] ss:$16 sps:$4 sm:$0xff]   ;;  %v377_v9 = vld [vmem:[%s574_s1 + $0x44] ss:$16 sps:$4 sm:$0xff]  }
   0x4   :  { %233 = vmatprep.subr.bf16.mxu0 %v371_v5  ;;  %274 = vmatprep.subr.bf16.mxu1 %v373_v6  ;;  %v379_v10 = vld [vmem:[%s574_s1 + $0x4c] ss:$16 sps:$4 sm:$0xff]   ;;  %v381_v11 = vld [vmem:[%s574_s1 + $0x40] ss:$16 sps:$4 sm:$0xff]   ;;  %v382_v12 = vld [vmem:[%s574_s1 + $0x48] ss:$16 sps:$4 sm:$0xff]  }
   0x5   :  { %v383_v13 = vld [vmem:[%s574_s1 + $0x64] ss:$16 sps:$4 sm:$0xff]   ;;  %v385_v14 = vld [vmem:[%s574_s1 + $0x6c] ss:$16 sps:$4 sm:$0xff]   ;;  %v387_v15 = vld [vmem:[%s574_s1 + $0x60] ss:$16 sps:$4 sm:$0xff]  }
   0x6   :  { %v388_v16 = vld [vmem:[%s574_s1 + $0x68] ss:$16 sps:$4 sm:$0xff]   ;;  %v389_v17 = vld [vmem:[%s574_s1 + $0x84] ss:$16 sps:$4 sm:$0xff]   ;;  %v391_v18 = vld [vmem:[%s574_s1 + $0x8c] ss:$16 sps:$4 sm:$0xff]  }
   0x7   :  { %234 = vmatpush1.bf16.msra.mxu0 %v375_v7  ;;  %275 = vmatpush1.bf16.msra.mxu1 %v376_v8  ;;  %v393_v19 = vld [vmem:[%s574_s1 + $0x80] ss:$16 sps:$4 sm:$0xff]   ;;  %v394_v20 = vld [vmem:[%s574_s1 + $0x88] ss:$16 sps:$4 sm:$0xff]   ;;  %v395_v21 = vld [vmem:[%s574_s1 + $0xa4] ss:$16 sps:$4 sm:$0xff]  }
   0x8   :  { %235 = vmatprep.subr.bf16.mxu0 %v377_v9  ;;  %276 = vmatprep.subr.bf16.mxu1 %v379_v10  ;;  %v397_v22 = vld [vmem:[%s574_s1 + $0xac] ss:$16 sps:$4 sm:$0xff]   ;;  %v399_v23 = vld [vmem:[%s574_s1 + $0xa0] ss:$16 sps:$4 sm:$0xff]   ;;  %v400_v24 = vld [vmem:[%s574_s1 + $0xa8] ss:$16 sps:$4 sm:$0xff]  }
   0x9   :  { %v401_v25 = vld [vmem:[%s574_s1 + $0xc4] ss:$16 sps:$4 sm:$0xff]   ;;  %v403_v26 = vld [vmem:[%s574_s1 + $0xcc] ss:$16 sps:$4 sm:$0xff]  }
   0xb   :  { %236 = vmatpush1.bf16.msra.mxu0 %v381_v11  ;;  %277 = vmatpush1.bf16.msra.mxu1 %v382_v12 }
   0xc   :  { %237 = vmatprep.subr.bf16.mxu0 %v383_v13  ;;  %278 = vmatprep.subr.bf16.mxu1 %v385_v14 }
   0xf   :  { %238 = vmatpush1.bf16.msra.mxu0 %v387_v15  ;;  %279 = vmatpush1.bf16.msra.mxu1 %v388_v16 }
  0x10   :  { %239 = vmatprep.subr.bf16.mxu0 %v389_v17  ;;  %280 = vmatprep.subr.bf16.mxu1 %v391_v18 }
  0x13   :  { %240 = vmatpush1.bf16.msra.mxu0 %v393_v19  ;;  %281 = vmatpush1.bf16.msra.mxu1 %v394_v20 }
  0x14   :  { %241 = vmatprep.subr.bf16.mxu0 %v395_v21  ;;  %282 = vmatprep.subr.bf16.mxu1 %v397_v22 }
  0x15   :  { %8 = vsyncpa [#allocation3], 0  ;;  %v405_v27 = vld [vmem:[%s574_s1 + $0xc0] ss:$16 sps:$4 sm:$0xff]   ;;  %v406_v28 = vld [vmem:[%s574_s1 + $0xc8] ss:$16 sps:$4 sm:$0xff]   ;;  %v51_v34 = vlaneseq }
  0x16   :  { %v407_v29 = vld [vmem:[%s574_s1 + $0xe4] ss:$16 sps:$4 sm:$0xff]   ;;  %v409_v30 = vld [vmem:[%s574_s1 + $0xec] ss:$16 sps:$4 sm:$0xff]   ;;  %v411_v31 = vld [vmem:[%s574_s1 + $0xe0] ss:$16 sps:$4 sm:$0xff]  }
  0x17   :  { %242 = vmatpush1.bf16.msra.mxu0 %v399_v23  ;;  %283 = vmatpush1.bf16.msra.mxu1 %v400_v24  ;;  %v412_v32 = vld [vmem:[%s574_s1 + $0xe8] ss:$16 sps:$4 sm:$0xff]   ;;  %v16_v33 = vld [vmem:[%s573_s0] sm:$0xf]  ;;  %v52_v35 = vshrl.u32 %v51_v34, 7  ;;  %s438_s1 = smov [#allocation2]  }
  0x18   :  { %243 = vmatprep.subr.bf16.mxu0 %v401_v25  ;;  %284 = vmatprep.subr.bf16.mxu1 %v403_v26  ;;  %v49_v38 = vld [vmem:[%s575_s2] sm:$0xf]  ;;  %s323_s26 = sshll.u32 %s438_s1, 4  ;;  %s324_s26 = int_to_ptr.vmem [resolvable:$true] %s323_s26 }
  0x19   :  { %v53_v36 = vsub.s32 0, %v52_v35  ;;  %v61_v37 = vsub.s32 2, %v52_v35  ;;  %v57_v39 = vsub.s32 1, %v52_v35  ;;  %v65_v40 = vsub.s32 3, %v52_v35  ;;  %s413_s0 = scalar_lea.vmem %s324_s26, 512  ;;  %p418_p1 = scmp.lt.s32.totalorder %s324_s26, %s324_s26 }
  0x1a   :  { %p414_p0 = scmp.ne.s32.totalorder %s324_s26, %s413_s0  ;;  %p419_p2 = scmp.lt.s32.totalorder %s413_s0, %s413_s0 }
  0x1b   :  { %244 = vmatpush1.bf16.msra.mxu0 %v405_v27  ;;  %285 = vmatpush1.bf16.msra.mxu1 %v406_v28  ;;  %v54_v41 = vrot.slane %v49_v38, %v53_v36  ;;  %v62_v42 = vrot.slane %v49_v38, %v61_v37  ;;  %v58_v43 = vrot.slane %v49_v38, %v57_v39 }
  0x1c   :  { %245 = vmatprep.subr.bf16.mxu0 %v407_v29  ;;  %286 = vmatprep.subr.bf16.mxu1 %v409_v30  ;;  %v66_v44 = vrot.slane %v49_v38, %v65_v40  ;;  %p420_p3 = por %p419_p2, %p418_p1 }
  0x1e   :  { %p421_p4 = pnand %p420_p3, %p414_p0 }
  0x1f   :  { %246 = vmatpush1.bf16.msra.mxu0 %v411_v31  ;;  %287 = vmatpush1.bf16.msra.mxu1 %v412_v32 }
  0x22   :  { %264 = vmatmul.mubr.bf16.vlgmr.msra.gmra.mrb[0].mxu0 %v16_v33  ;;  %305 = vmatmul.mubr.bf16.vlgmr.msra.gmra.mrb[0].mxu1 %v16_v33 }
  0xf5   :  { %v265_v45 = vpop.f32.mrb[0].mxu0  ;;  %v306_v46 = vpop.f32.mrb[0].mxu1 }
  0xf6   :  { %v266_v47 = vadd.f32 %v265_v45, %v54_v41  ;;  %v307_v48 = vadd.f32 %v306_v46, %v62_v42  ;;  %v267_v49 = vpop.f32.mrb[1].mxu0  ;;  %v308_v50 = vpop.f32.mrb[1].mxu1 }
  0xf7   :  { %v268_v51 = vadd.f32 %v267_v49, %v58_v43  ;;  %v309_v52 = vadd.f32 %v308_v50, %v66_v44  ;;  %v269_v53 = vpop.f32.mrb[2].mxu0  ;;  %v310_v54 = vpop.f32.mrb[2].mxu1 }
  0xf8   :  { %313 = vst [vmem:[#allocation2] sm:$0xff] %v266_v47  ;;  %315 = vst [vmem:[#allocation2 + $0x10] sm:$0xff] %v307_v48  ;;  %v270_v55 = vpop.f32.mrb[3].mxu0  ;;  %v311_v56 = vpop.f32.mrb[3].mxu1 }
  0xf9   :  { %314 = vst [vmem:[#allocation2 + $0x8] sm:$0xff] %v268_v51  ;;  %316 = vst [vmem:[#allocation2 + $0x18] sm:$0xff] %v309_v52 }
  0xfa   :  { %424 = shalt.err (!%p421_p4)
}
  0xfb   :  { %s425_s28 = scalar_lea.hbm %s576_s3, 512 }
  0xfc   :  { %p426_p5 = scmp.ne.s32.totalorder %s576_s3, %s425_s28  ;;  %p429_p6 = scmp.lt.u32.totalorder %s425_s28, %s576_s3 }
  0xfe   :  { %p431_p7 = pnand %p429_p6, %p426_p5 }
 0x100   :  { %434 = shalt.err (!%p431_p7)
}
 0x101   :  { %326 = dma.vmem_to_hbm [thread:$0]  %s324_s26, 512, %s576_s3, [#allocation3]  }
 0x102   :  { %435 = dma.done.wait [#allocation3], 512  }
 0x103   :  { %436 = vsyncadd [#allocation3], 4294966784 }
 0x104   :  { %330 = vsyncpa [#allocation3], 1 }

// kernel: _forward_padded.2
= control target key start
LH: loop header
LB: loop body
LE: loop exit
PB: predicated region body
PF: predicated region fallthrough
CT: control target
= control target key end

     0   :  { %8 = vsyncpa [#allocation4], 0  ;;  %s689_s0 = inlined_call_operand.hbm [shape: bf16[8,512], index: 0, kind: input, shape index: {}]   ;;  %s690_s1 = inlined_call_operand.hbm [shape: bf16[512,128], index: 1, kind: input, shape index: {}]   ;;  %s691_s2 = inlined_call_operand.hbm [shape: f32[1,128], index: 2, kind: input, shape index: {}]   ;;  %s692_s3 = inlined_call_operand.vmem [shape: bf16[8,128], index: 3, kind: output, shape index: {}]  }
   0x1   :  { %9 = vsyncpa [#allocation6], 0  ;;  %s625_s12 = smov [#allocation5]   ;;  %s555_s16 = scalar_lea.hbm %s690_s1, 4096 }
   0x2   :  { %s25_s13 = sshll.u32 %s625_s12, 4  ;;  %p556_p0 = scmp.ne.s32.totalorder %s690_s1, %s555_s16  ;;  %s26_s13 = int_to_ptr.vmem [resolvable:$true] %s25_s13 }
   0x3   :  { %p559_p1 = scmp.lt.u32.totalorder %s555_s16, %s690_s1 }
   0x5   :  { %p561_p2 = pnand %p559_p1, %p556_p0 }
   0x7   :  { %564 = shalt.err (!%p561_p2)
}
   0x8   :  { %s565_s21 = scalar_lea.vmem %s26_s13, 4096  ;;  %p570_p4 = scmp.lt.s32.totalorder %s26_s13, %s26_s13 }
   0x9   :  { %p566_p3 = scmp.ne.s32.totalorder %s26_s13, %s565_s21  ;;  %p571_p5 = scmp.lt.s32.totalorder %s565_s21, %s565_s21 }
   0xb   :  { %p572_p6 = por %p571_p5, %p570_p4 }
   0xd   :  { %p573_p7 = pnand %p572_p6, %p566_p3 }
   0xf   :  { %576 = shalt.err (!%p573_p7)
}
  0x10   :  { %s626_s22 = smov 64   ;;  %s627_s23 = smov 4  }
  0x11   :  { %31 = dma.hbm_to_vmem [thread:$0]  %s690_s1, 4096, %s26_s13, [#allocation6], %s626_s22, %s626_s22, %s627_s23  }
  0x12   :  { %s628_s26 = smov [#allocation3]   ;;  %s629_s28 = smov [#allocation7]  }
  0x13   :  { %s16_s27 = sshll.u32 %s628_s26, 4  ;;  %s38_s29 = sshll.u32 %s629_s28, 4  ;;  %s17_s27 = int_to_ptr.vmem [resolvable:$true] %s16_s27  ;;  %s39_s29 = int_to_ptr.vmem [resolvable:$true] %s38_s29 }
  0x14   :  { %s577_s5 = scalar_lea.hbm %s689_s0, 256 }
  0x15   :  { %p578_p8 = scmp.ne.s32.totalorder %s689_s0, %s577_s5  ;;  %p581_p9 = scmp.lt.u32.totalorder %s577_s5, %s689_s0 }
  0x17   :  { %p583_p10 = pnand %p581_p9, %p578_p8 }
  0x19   :  { %586 = shalt.err (!%p583_p10)
}
  0x1a   :  { %s587_s1 = scalar_lea.vmem %s17_s27, 256  ;;  %p592_p12 = scmp.lt.s32.totalorder %s17_s27, %s17_s27 }
  0x1b   :  { %p588_p11 = scmp.ne.s32.totalorder %s17_s27, %s587_s1  ;;  %p593_p13 = scmp.lt.s32.totalorder %s587_s1, %s587_s1 }
  0x1d   :  { %p594_p0 = por %p593_p13, %p592_p12 }
  0x1f   :  { %p595_p1 = pnand %p594_p0, %p588_p11 }
  0x21   :  { %598 = shalt.err (!%p595_p1)
}
  0x22   :  { %19 = dma.hbm_to_vmem [thread:$0]  %s689_s0, 256, %s17_s27, [#allocation4]  }
  0x23   :  { %s599_s14 = scalar_lea.hbm %s691_s2, 16 }
  0x24   :  { %p600_p2 = scmp.ne.s32.totalorder %s691_s2, %s599_s14  ;;  %p603_p3 = scmp.lt.u32.totalorder %s599_s14, %s691_s2 }
  0x26   :  { %p605_p4 = pnand %p603_p3, %p600_p2 }
  0x28   :  { %608 = shalt.err (!%p605_p4)
}
  0x29   :  { %s609_s19 = scalar_lea.vmem %s39_s29, 16  ;;  %s613_s20 = scalar_lea.vmem %s39_s29, 32 }
  0x2a   :  { %p610_p5 = scmp.ne.s32.totalorder %s39_s29, %s609_s19  ;;  %p614_p6 = scmp.lt.s32.totalorder %s39_s29, %s39_s29 }
  0x2b   :  { %p615_p7 = scmp.lt.s32.totalorder %s613_s20, %s609_s19 }
  0x2d   :  { %p616_p8 = por %p615_p7, %p614_p6 }
  0x2f   :  { %p617_p9 = pnand %p616_p8, %p610_p5 }
  0x31   :  { %620 = shalt.err (!%p617_p9)
}
  0x32   :  { %41 = dma.hbm_to_vmem [thread:$0]  %s691_s2, 16, %s39_s29, [#allocation6]  }
  0x33   :  { %621 = dma.done.wait [#allocation4], 256  }
  0x34   :  { %622 = vsyncadd [#allocation4], 4294967040 }
  0x35   :  { %623 = dma.done.wait [#allocation6], 4112  }
  0x36   :  { %624 = vsyncadd [#allocation6], 4294963184  ;;  %v519_v0 = vld [vmem:[#allocation5 + $0x40] sm:$0xff]   ;;  %v523_v4 = vld [vmem:[#allocation5 + $0x48] sm:$0xff]  }
  0x37   :  { %v520_v1 = vld [vmem:[#allocation5 + $0xc0] sm:$0xff]   ;;  %470 = vmatprep.subr.bf16.mxu0 %v519_v0  ;;  %v524_v5 = vld [vmem:[#allocation5 + $0xc8] sm:$0xff]   ;;  %v527_v8 = vld [vmem:[#allocation5 + $0x50] sm:$0xff]  }
  0x38   :  { %v521_v2 = vld [vmem:[#allocation5] sm:$0xff]   ;;  %492 = vmatprep.subr.bf16.mxu1 %v520_v1  ;;  %v525_v6 = vld [vmem:[#allocation5 + $0x8] sm:$0xff]   ;;  %v528_v9 = vld [vmem:[#allocation5 + $0xd0] sm:$0xff]  }
  0x39   :  { %v522_v3 = vld [vmem:[#allocation5 + $0x80] sm:$0xff]   ;;  %471 = vmatpush3.bf16.msra.mxu0 %v521_v2  ;;  %v526_v7 = vld [vmem:[#allocation5 + $0x88] sm:$0xff]   ;;  %v529_v10 = vld [vmem:[#allocation5 + $0x10] sm:$0xff]  }
  0x3a   :  { %493 = vmatpush3.bf16.msra.mxu1 %v522_v3  ;;  %472 = vmatprep.subr.bf16.mxu0 %v523_v4  ;;  %v530_v11 = vld [vmem:[#allocation5 + $0x90] sm:$0xff]   ;;  %v531_v12 = vld [vmem:[#allocation5 + $0x58] sm:$0xff]   ;;  %v535_v16 = vld [vmem:[#allocation5 + $0x60] sm:$0xff]  }
  0x3b   :  { %494 = vmatprep.subr.bf16.mxu1 %v524_v5  ;;  %v532_v13 = vld [vmem:[#allocation5 + $0xd8] sm:$0xff]   ;;  %v536_v17 = vld [vmem:[#allocation5 + $0xe0] sm:$0xff]   ;;  %v539_v20 = vld [vmem:[#allocation5 + $0x68] sm:$0xff]  }
  0x3c   :  { %v533_v14 = vld [vmem:[#allocation5 + $0x18] sm:$0xff]   ;;  %v537_v18 = vld [vmem:[#allocation5 + $0x20] sm:$0xff]   ;;  %v540_v21 = vld [vmem:[#allocation5 + $0xe8] sm:$0xff]  }
  0x3d   :  { %473 = vmatpush3.bf16.msra.mxu0 %v525_v6  ;;  %v534_v15 = vld [vmem:[#allocation5 + $0x98] sm:$0xff]   ;;  %v538_v19 = vld [vmem:[#allocation5 + $0xa0] sm:$0xff]   ;;  %v541_v22 = vld [vmem:[#allocation5 + $0x28] sm:$0xff]  }
  0x3e   :  { %495 = vmatpush3.bf16.msra.mxu1 %v526_v7  ;;  %474 = vmatprep.subr.bf16.mxu0 %v527_v8  ;;  %v542_v23 = vld [vmem:[#allocation5 + $0xa8] sm:$0xff]   ;;  %v543_v24 = vld [vmem:[#allocation5 + $0x70] sm:$0xff]   ;;  %v547_v28 = vld [vmem:[#allocation5 + $0x78] sm:$0xff]  }
  0x3f   :  { %496 = vmatprep.subr.bf16.mxu1 %v528_v9  ;;  %v544_v25 = vld [vmem:[#allocation5 + $0xf0] sm:$0xff]   ;;  %v548_v29 = vld [vmem:[#allocation5 + $0xf8] sm:$0xff]   ;;  %v469_v46 = vld [vmem:[#allocation7] ss:$0 sm:$0xff] }
  0x40   :  { %v545_v26 = vld [vmem:[#allocation5 + $0x30] sm:$0xff]   ;;  %v549_v30 = vld [vmem:[#allocation5 + $0x38] sm:$0xff]  }
  0x41   :  { %475 = vmatpush3.bf16.msra.mxu0 %v529_v10  ;;  %v546_v27 = vld [vmem:[#allocation5 + $0xb0] sm:$0xff]   ;;  %v550_v31 = vld [vmem:[#allocation5 + $0xb8] sm:$0xff]  }
  0x42   :  { %497 = vmatpush3.bf16.msra.mxu1 %v530_v11  ;;  %476 = vmatprep.subr.bf16.mxu0 %v531_v12  ;;  %v58_v32 = vld [vmem:[#allocation3] sm:$0xff]  ;;  %v59_v33 = vld [vmem:[#allocation3 + $0x8] sm:$0xff] }
  0x43   :  { %498 = vmatprep.subr.bf16.mxu1 %v532_v13  ;;  %v433_v34 = vcombine.low %v58_v32, %v58_v32  ;;  %v434_v35 = vcombine.high %v58_v32, %v58_v32  ;;  %v435_v36 = vcombine.low %v59_v33, %v59_v33  ;;  %v436_v37 = vcombine.high %v59_v33, %v59_v33 }
  0x45   :  { %477 = vmatpush3.bf16.msra.mxu0 %v533_v14  ;;  %362 = vmatprep.mubr.bf16.mxu0 %v434_v35 }
  0x46   :  { %499 = vmatpush3.bf16.msra.mxu1 %v534_v15  ;;  %478 = vmatprep.subr.bf16.mxu0 %v535_v16 }
  0x47   :  { %500 = vmatprep.subr.bf16.mxu1 %v536_v17  ;;  %402 = vmatprep.mubr.bf16.mxu1 %v436_v37 }
  0x49   :  { %479 = vmatpush3.bf16.msra.mxu0 %v537_v18 }
  0x4a   :  { %501 = vmatpush3.bf16.msra.mxu1 %v538_v19  ;;  %480 = vmatprep.subr.bf16.mxu0 %v539_v20 }
  0x4b   :  { %502 = vmatprep.subr.bf16.mxu1 %v540_v21 }
  0x4d   :  { %481 = vmatpush3.bf16.msra.mxu0 %v541_v22 }
  0x4e   :  { %503 = vmatpush3.bf16.msra.mxu1 %v542_v23  ;;  %482 = vmatprep.subr.bf16.mxu0 %v543_v24 }
  0x4f   :  { %504 = vmatprep.subr.bf16.mxu1 %v544_v25 }
  0x51   :  { %483 = vmatpush3.bf16.msra.mxu0 %v545_v26 }
  0x52   :  { %505 = vmatpush3.bf16.msra.mxu1 %v546_v27  ;;  %484 = vmatprep.subr.bf16.mxu0 %v547_v28 }
  0x53   :  { %506 = vmatprep.subr.bf16.mxu1 %v548_v29 }
  0x55   :  { %485 = vmatpush3.bf16.msra.mxu0 %v549_v30 }
  0x56   :  { %507 = vmatpush3.bf16.msra.mxu1 %v550_v31 }
  0x58   :  { %363 = vmatmul.mubr.bf16.vlgmr.msra.gmra.mrb[0].mxu0 %v433_v34 }
  0x59   :  { %403 = vmatmul.mubr.bf16.vlgmr.msra.gmra.mrb[0].mxu1 %v435_v36 }
 0x12b   :  { %v486_v38 = vpop.f32.mrb[0].mxu0 }
 0x12c   :  { %v508_v39 = vpop.f32.mrb[0].mxu1  ;;  %v487_v40 = vpop.f32.mrb[1].mxu0 }
 0x12d   :  { %v509_v41 = vpop.f32.mrb[1].mxu1  ;;  %v488_v42 = vadd.f32 %v487_v40, %v486_v38  ;;  %v489_v44 = vpop.f32.mrb[2].mxu0 }
 0x12e   :  { %v510_v43 = vadd.f32 %v509_v41, %v508_v39  ;;  %v511_v45 = vpop.f32.mrb[2].mxu1  ;;  %v490_v47 = vpop.f32.mrb[3].mxu0 }
 0x12f   :  { %v512_v48 = vpop.f32.mrb[3].mxu1 }
 0x130   :  { %v405_v49 = vadd.f32 %v510_v43, %v488_v42 }
 0x132   :  { %v423_v50 = vadd.f32 %v469_v46, %v405_v49 }
 0x134   :  { %v424_v51 = vmax.f32 %v423_v50, 0.0 }
 0x136   :  { %v425_v52 = vpack.c.bf16 %v424_v51, %v424_v51 }
 0x138   :  { %426 = vst [vmem:[%s692_s3] sm:$0xf] %v425_v52 }
 0x139   :  { %431 = vsyncpa [#allocation4], 1 }
 0x13a   :  { %432 = vsyncpa [#allocation6], 1 }

</bundles_post_ra>
